<compile_context>
chip_gen: v5e
topology: v5e:2x2
jax: 0.10.0
libtpu: 0.0.40
codegen_flags: <defaults>
</compile_context>

<pallas_src>
import jax
import jax.numpy as jnp
from jax.experimental import pallas as pl
from jax.experimental.pallas import tpu as pltpu


def _round_up(n: int, m: int) -> int:
    return ((n + m - 1) // m) * m


def linear_sigmoid_kernel(x_ref, w_ref, b_ref, o_ref):
    # x_ref: (TB, F) f32-castable -- natural (batch, feature) tile
    # w_ref: (1, F)  f32          -- VMEM-resident weights (sublane broadcast)
    # b_ref: (1,)    f32          -- SMEM scalar
    # o_ref: (1, TB) x.dtype      -- lane-dense output slab (batch on lanes)
    x = x_ref[...].astype(jnp.float32)
    prod = x * w_ref[...]                            # VPU elementwise, (TB, F)
    col = jnp.sum(prod, axis=1, keepdims=True)       # XLU lane reduce -> (TB, 1)
    row = col.T                                      # relayout B scalars -> (1, TB)
    # Bias + sigmoid on dense (1, TB) vregs: VALU add + EUP logistic.
    o_ref[...] = jax.nn.sigmoid(row + b_ref[0]).astype(o_ref.dtype)


def linear_sigmoid(x, w, b, *, block_b: int = 8192, use_pallas=None):
    """x: (B, F), w: (F, 1) or (F,), b: (1,)  ->  (B, 1).
    Same semantics as torch.nn.Linear(F, 1) followed by Sigmoid."""
    B, F = x.shape
    w_row = jnp.asarray(w, jnp.float32).reshape(1, F)
    b_vec = jnp.asarray(b, jnp.float32).reshape(1)

    # Small-B fast path: at a few thousand rows or less the Pallas pipeline is
    # pure launch/DMA overhead -- let XLA fuse the whole thing.
    if use_pallas is None:
        use_pallas = B >= 4096
    if not use_pallas:
        y = jax.nn.sigmoid(jnp.dot(x.astype(jnp.float32), w_row.T) + b_vec)
        return y.astype(x.dtype)

    # Batch tile: multiple of 128 (lane constraint on the (1, tb) output
    # block), capped at block_b, and chosen so the grid has >= 2 steps when B
    # allows it (keeps both v7x TensorCores busy via "parallel" semantics).
    tb = min(block_b, max(128, _round_up(pl.cdiv(B, 2), 128)))
    grid = (pl.cdiv(B, tb),)   # ragged last tile: OOB rows read padding,
                               # their results are masked on store / sliced off.

    out = pl.pallas_call(
        linear_sigmoid_kernel,
        out_shape=jax.ShapeDtypeStruct((1, B), x.dtype),
        grid=grid,
        in_specs=[
            pl.BlockSpec((tb, F), lambda i: (i, 0)),              # stream x tiles
            pl.BlockSpec((1, F), lambda i: (0, 0)),               # resident weights
            pl.BlockSpec(memory_space=pltpu.MemorySpace.SMEM),    # bias scalar
        ],
        out_specs=pl.BlockSpec((1, tb), lambda i: (0, i)),
        compiler_params=pltpu.CompilerParams(
            dimension_semantics=("parallel",),       # shard B-tiles across TCs (v7x)
            vmem_limit_bytes=32 * 1024 * 1024,       # needed on v5e (16 MiB default),
        ),                                           # safe on v7x (64 MiB physical)
    )(x, w_row, b_vec)

    # (1, B) -> (B, 1): pure metadata reshape, already in x.dtype.
    return out[0].reshape(B, 1)


if __name__ == "__main__":
    key = jax.random.PRNGKey(0)
    kx, kw, kb, kx2 = jax.random.split(key, 4)

    F = 30
    bound = 1.0 / (F ** 0.5)
    w = jax.random.uniform(kw, (F, 1), minval=-bound, maxval=bound, dtype=jnp.float32)
    b = jax.random.uniform(kb, (1,), minval=-bound, maxval=bound, dtype=jnp.float32)

    # Small batch consistent with the module.  Force the Pallas path so the
    # kernel itself is exercised (default dispatch would take the XLA fast
    # path at this size).
    B = 8
    x = jax.random.normal(kx, (B, F), dtype=jnp.float32)
    out = linear_sigmoid(x, w, b, use_pallas=True)
    jax.block_until_ready(out)
    ref = jax.nn.sigmoid(x @ w + b.reshape(1, 1))
    assert out.shape == (B, 1)
    assert jnp.allclose(out, ref, atol=1e-5), "mismatch vs reference (B=8)"

    # Ragged multi-tile case: B not a multiple of the tile, grid of 2.
    B2 = 300
    x2 = jax.random.normal(kx2, (B2, F), dtype=jnp.float32)
    out2 = linear_sigmoid(x2, w, b, use_pallas=True)
    jax.block_until_ready(out2)
    ref2 = jax.nn.sigmoid(x2 @ w + b.reshape(1, 1))
    assert out2.shape == (B2, 1)
    assert jnp.allclose(out2, ref2, atol=1e-5), "mismatch vs reference (B=300)"

    # Default dispatch (small-B XLA fast path) must agree as well.
    out3 = linear_sigmoid(x, w, b)
    assert jnp.allclose(out3, ref, atol=1e-5), "mismatch vs reference (fast path)"

    print("KERNEL_OK")
</pallas_src>

<mosaic_0001>
module attributes {stable_mosaic.version = 11 : i64} {
  func.func @linear_sigmoid_kernel(%arg0: i32, %arg1: memref<128x30xf32, #tpu.memory_space<vmem>>, %arg2: memref<1x30xf32, #tpu.memory_space<vmem>>, %arg3: memref<1xf32, #tpu.memory_space<smem>>, %arg4: memref<1x128xf32, #tpu.memory_space<vmem>>) attributes {dimension_semantics = [#tpu.dimension_semantics<parallel>], iteration_bounds = array<i64: 1>, scalar_prefetch = 0 : i64, scratch_operands = 0 : i64, tpu.core_type = #tpu.core_type<tc>, window_params = [{transform_indices = @transform_0, window_bounds = array<i64: 128, 30>}, {pipeline_mode = #tpu.pipeline_mode<synchronous>, transform_indices = @transform_1, window_bounds = array<i64: 1, 30>}, {transform_indices = @transform_2, window_bounds = array<i64: 1>}, {transform_indices = @transform_3, window_bounds = array<i64: 1, 128>}]} {
    %c0 = arith.constant 0 : index
    %c0_0 = arith.constant 0 : index
    %0 = vector.load %arg1[%c0, %c0_0] : memref<128x30xf32, #tpu.memory_space<vmem>>, vector<128x30xf32>
    %c0_1 = arith.constant 0 : index
    %c0_2 = arith.constant 0 : index
    %1 = vector.load %arg2[%c0_1, %c0_2] : memref<1x30xf32, #tpu.memory_space<vmem>>, vector<1x30xf32>
    %2 = vector.broadcast %1 : vector<1x30xf32> to vector<128x30xf32>
    %3 = arith.mulf %0, %2 : vector<128x30xf32>
    %cst = arith.constant dense<0.000000e+00> : vector<128xf32>
    %4 = vector.multi_reduction <add>, %3, %cst [1] : vector<128x30xf32> to vector<128xf32>
    %5 = vector.shape_cast %4 : vector<128xf32> to vector<128x1xf32>
    %6 = tpu.transpose %5, [1, 0] : vector<128x1xf32> -> vector<1x128xf32>
    %c0_3 = arith.constant 0 : index
    %7 = memref.load %arg3[%c0_3] : memref<1xf32, #tpu.memory_space<smem>>
    %8 = vector.broadcast %7 : f32 to vector<1x128xf32>
    %9 = arith.addf %6, %8 : vector<1x128xf32>
    %10 = arith.negf %9 : vector<1x128xf32>
    %11 = math.exp %10 : vector<1x128xf32>
    %cst_4 = arith.constant 1.000000e+00 : f32
    %12 = vector.broadcast %cst_4 : f32 to vector<1x128xf32>
    %13 = arith.addf %12, %11 : vector<1x128xf32>
    %14 = arith.divf %12, %13 : vector<1x128xf32>
    %c0_5 = arith.constant 0 : index
    %c0_6 = arith.constant 0 : index
    %15 = vector.load %arg4[%c0_5, %c0_6] : memref<1x128xf32, #tpu.memory_space<vmem>>, vector<1x128xf32>
    tpu.vector_store %arg4[%c0_5, %c0_6], %14 {strides = array<i32>} : memref<1x128xf32, #tpu.memory_space<vmem>>, vector<1x128xf32>,
    return
  }
  func.func @transform_0(%arg0: i32) -> (i32, i32) {
    %c0_i32 = arith.constant 0 : i32
    %c0_i32_0 = arith.constant 0 : i32
    return %arg0, %c0_i32 : i32, i32
  }
  func.func @transform_1(%arg0: i32) -> (i32, i32) {
    %c0_i32 = arith.constant 0 : i32
    %c0_i32_0 = arith.constant 0 : i32
    %c0_i32_1 = arith.constant 0 : i32
    return %c0_i32, %c0_i32_0 : i32, i32
  }
  func.func @transform_2(%arg0: i32) -> i32 {
    %c0_i32 = arith.constant 0 : i32
    %c0_i32_0 = arith.constant 0 : i32
    return %c0_i32 : i32
  }
  func.func @transform_3(%arg0: i32) -> (i32, i32) {
    %c0_i32 = arith.constant 0 : i32
    %c0_i32_0 = arith.constant 0 : i32
    return %c0_i32, %arg0 : i32, i32
  }
}

</mosaic_0001>

<bundles_post_ra>
// kernel: tpu_custom_call.1
= control target key start
LH: loop header
LB: loop body
LE: loop exit
PB: predicated region body
PF: predicated region fallthrough
CT: control target
= control target key end

     0   :  { %9 = vsyncpa [#allocation4], 0  ;;  %s303_s0 = inlined_call_operand.hbm [shape: f32[8,30], index: 0, kind: input, shape index: {}]   ;;  %s304_s1 = inlined_call_operand.vmem [shape: f32[1,30], index: 1, kind: input, shape index: {}]   ;;  %s305_s2 = inlined_call_operand.<no memory space> [shape: f32[1], index: 2, kind: input, shape index: {}]   ;;  %s306_s3 = inlined_call_operand.hbm [shape: f32[1,8], index: 3, kind: output, shape index: {}]  }
   0x1   :  { %10 = vsyncpa [#allocation5], 0 }
   0x2   :  { %14 = vsyncadd [#allocation4], 1920  ;;  %s15_s14 = sshll.u32 %s303_s0, 4  ;;  %s251_s15 = smov [#allocation3]   ;;  %s16_s14 = int_to_ptr.hbm [resolvable:$true] %s15_s14 }
   0x3   :  { %s17_s16 = sshll.u32 %s251_s15, 4  ;;  %s252_s17 = smov 128   ;;  %s18_s16 = int_to_ptr.vmem [resolvable:$true] %s17_s16 }
   0x4   :  { %s253_s18 = smov 8  }
   0x5   :  { %23 = dma.hbm_to_vmem [thread:$0]  %s16_s14, 128, %s18_s16, [#allocation4], %s252_s17, %s252_s17, %s253_s18  }
   0x6   :  { %247 = dma.done.wait [#allocation4], 2048  }
   0x7   :  { %248 = vsyncadd [#allocation4], 4294965248  ;;  %v32_v0 = vld [vmem:[#allocation3] sm:$0xff]  ;;  %vm68_vm0 = vcmask 244736   ;;  %v34_v2 = vld [vmem:[#allocation3 + $0x10] sm:$0xff]  ;;  %s254_s21 = smov [#allocation6]  }
   0x8   :  { %v194_v1 = vld [vmem:[%s304_s1] ss:$0 sm:$0xff]  ;;  %v33_v6 = vld [vmem:[#allocation3 + $0x8] sm:$0xff]  ;;  %v35_v7 = vld [vmem:[#allocation3 + $0x18] sm:$0xff]  ;;  %s177_s22 = sshll.u32 %s254_s21, 4  ;;  %s178_s22 = int_to_ptr.vmem [resolvable:$true] %s177_s22 }
   0x9   :  { %v52_v3 = vmul.f32 %v194_v1, %v32_v0  ;;  %v54_v4 = vmul.f32 %v194_v1, %v34_v2  ;;  %v36_v5 = vld [vmem:[#allocation3 + $0x20] sm:$0xff]  ;;  %v37_v11 = vld [vmem:[#allocation3 + $0x28] sm:$0xff]  ;;  %v53_v13 = vmul.f32 %v194_v1, %v33_v6  ;;  %v55_v14 = vmul.f32 %v194_v1, %v35_v7  ;;  %v39_v19 = vld [vmem:[#allocation3 + $0x38] sm:$0xff] }
   0xa   :  { %v56_v8 = vmul.f32 %v194_v1, %v36_v5  ;;  %v57_v15 = vmul.f32 %v194_v1, %v37_v11  ;;  %v38_v20 = vld [vmem:[#allocation3 + $0x30] sm:$0xff]  ;;  %v40_v21 = vld [vmem:[#allocation3 + $0x40] sm:$0xff]  ;;  %v59_v22 = vmul.f32 %v194_v1, %v39_v19  ;;  %v41_v29 = vld [vmem:[#allocation3 + $0x48] sm:$0xff] }
   0xb   :  { %v69_v9 = vsel %vm68_vm0, %v52_v3, 0.0  ;;  %v75_v10 = vsel %vm68_vm0, %v54_v4, 0.0  ;;  %v72_v16 = vsel %vm68_vm0, %v53_v13, 0.0  ;;  %v78_v17 = vsel %vm68_vm0, %v55_v14, 0.0  ;;  %v42_v27 = vld [vmem:[#allocation3 + $0x50] sm:$0xff]  ;;  %v43_v30 = vld [vmem:[#allocation3 + $0x58] sm:$0xff] }
   0xc   :  { %70 = vadd.xlane.f32.xlu0 %v69_v9  ;;  %76 = vadd.xlane.f32.xlu1 %v75_v10  ;;  %v81_v12 = vsel %vm68_vm0, %v56_v8, 0.0  ;;  %v84_v18 = vsel %vm68_vm0, %v57_v15, 0.0  ;;  %v58_v23 = vmul.f32 %v194_v1, %v38_v20  ;;  %v60_v24 = vmul.f32 %v194_v1, %v40_v21  ;;  %v45_v36 = vld [vmem:[#allocation3 + $0x68] sm:$0xff]  ;;  %v44_v38 = vld [vmem:[#allocation3 + $0x60] sm:$0xff]  ;;  %v46_v39 = vld [vmem:[#allocation3 + $0x70] sm:$0xff] }
   0xd   :  { %82 = vadd.xlane.f32.xlu2 %v81_v12  ;;  %v90_v25 = vsel %vm68_vm0, %v59_v22, 0.0  ;;  %v62_v31 = vmul.f32 %v194_v1, %v42_v27  ;;  %v61_v32 = vmul.f32 %v194_v1, %v41_v29  ;;  %v63_v33 = vmul.f32 %v194_v1, %v43_v30  ;;  %v47_v46 = vld [vmem:[#allocation3 + $0x78] sm:$0xff] }
   0xe   :  { %v87_v26 = vsel %vm68_vm0, %v58_v23, 0.0  ;;  %v93_v28 = vsel %vm68_vm0, %v60_v24, 0.0  ;;  %v65_v40 = vmul.f32 %v194_v1, %v45_v36  ;;  %v64_v41 = vmul.f32 %v194_v1, %v44_v38 }
   0xf   :  { %v99_v34 = vsel %vm68_vm0, %v62_v31, 0.0  ;;  %v96_v35 = vsel %vm68_vm0, %v61_v32, 0.0  ;;  %v102_v37 = vsel %vm68_vm0, %v63_v33, 0.0  ;;  %v66_v42 = vmul.f32 %v194_v1, %v46_v39 }
  0x10   :  { %v108_v43 = vsel %vm68_vm0, %v65_v40, 0.0  ;;  %v105_v44 = vsel %vm68_vm0, %v64_v41, 0.0  ;;  %v67_v47 = vmul.f32 %v194_v1, %v47_v46  ;;  %v150_v1 = vstv %s305_s2  ;;  %s179_s2 = sshll.u32 %s306_s3, 4  ;;  %s180_s2 = int_to_ptr.hbm [resolvable:$true] %s179_s2 }
  0x11   :  { %v111_v45 = vsel %vm68_vm0, %v66_v42, 0.0 }
  0x12   :  { %v114_v48 = vsel %vm68_vm0, %v67_v47, 0.0 }
  0x14   :  { %73 = vadd.xlane.f32.xlu0 %v72_v16  ;;  %79 = vadd.xlane.f32.xlu1 %v78_v17 }
  0x15   :  { %85 = vadd.xlane.f32.xlu2 %v84_v18 }
  0x1c   :  { %91 = vadd.xlane.f32.xlu1 %v90_v25  ;;  %88 = vadd.xlane.f32.xlu0 %v87_v26 }
  0x1d   :  { %94 = vadd.xlane.f32.xlu2 %v93_v28 }
  0x24   :  { %100 = vadd.xlane.f32.xlu1 %v99_v34  ;;  %97 = vadd.xlane.f32.xlu0 %v96_v35 }
  0x25   :  { %103 = vadd.xlane.f32.xlu2 %v102_v37 }
  0x2c   :  { %109 = vadd.xlane.f32.xlu1 %v108_v43  ;;  %106 = vadd.xlane.f32.xlu0 %v105_v44 }
  0x2d   :  { %112 = vadd.xlane.f32.xlu2 %v111_v45 }
  0x34   :  { %115 = vadd.xlane.f32.xlu0 %v114_v48 }
  0x7f   :  { %v71_v49 = vpop.xlane.xlu0 %70  ;;  %v77_v51 = vpop.xlane.xlu1 %76 }
  0x80   :  { %117 = vxpose.xlu1.b32.start [1/16] (narrow) %v71_v49, 8  ;;  %v83_v53 = vpop.xlane.xlu2 %82 }
  0x87   :  { %v74_v50 = vpop.xlane.xlu0 %73  ;;  %v80_v52 = vpop.xlane.xlu1 %79 }
  0x88   :  { %118 = vxpose.xlu1.b32.cont [2/16] (narrow) %v74_v50, 8  ;;  %v86_v54 = vpop.xlane.xlu2 %85 }
  0x8f   :  { %v89_v55 = vpop.xlane.xlu0 %88  ;;  %v92_v56 = vpop.xlane.xlu1 %91 }
  0x90   :  { %119 = vxpose.xlu1.b32.cont [3/16] (narrow) %v77_v51, 8  ;;  %v95_v57 = vpop.xlane.xlu2 %94 }
  0x97   :  { %v98_v58 = vpop.xlane.xlu0 %97  ;;  %v101_v59 = vpop.xlane.xlu1 %100 }
  0x98   :  { %120 = vxpose.xlu1.b32.cont [4/16] (narrow) %v80_v52, 8  ;;  %v104_v60 = vpop.xlane.xlu2 %103 }
  0x9f   :  { %v107_v61 = vpop.xlane.xlu0 %106  ;;  %v110_v62 = vpop.xlane.xlu1 %109 }
  0xa0   :  { %121 = vxpose.xlu1.b32.cont [5/16] (narrow) %v83_v53, 8  ;;  %v113_v63 = vpop.xlane.xlu2 %112 }
  0xa7   :  { %v116_v0 = vpop.xlane.xlu0 %115 }
  0xa8   :  { %122 = vxpose.xlu1.b32.cont [6/16] (narrow) %v86_v54, 8 }
  0xb0   :  { %123 = vxpose.xlu1.b32.cont [7/16] (narrow) %v89_v55, 8 }
  0xb8   :  { %124 = vxpose.xlu1.b32.cont [8/16] (narrow) %v92_v56, 8 }
  0xc0   :  { %125 = vxpose.xlu1.b32.cont [9/16] (narrow) %v95_v57, 8 }
  0xc8   :  { %126 = vxpose.xlu1.b32.cont [10/16] (narrow) %v98_v58, 8 }
  0xd0   :  { %127 = vxpose.xlu1.b32.cont [11/16] (narrow) %v101_v59, 8 }
  0xd8   :  { %128 = vxpose.xlu1.b32.cont [12/16] (narrow) %v104_v60, 8 }
  0xe0   :  { %129 = vxpose.xlu1.b32.cont [13/16] (narrow) %v107_v61, 8 }
  0xe8   :  { %130 = vxpose.xlu1.b32.cont [14/16] (narrow) %v110_v62, 8 }
  0xf0   :  { %131 = vxpose.xlu1.b32.cont [15/16] (narrow) %v113_v63, 8 }
  0xf8   :  { %132 = vxpose.xlu1.b32.end [16/16] (narrow) %v116_v0, 8 }
 0x124   :  { %v133_v2 = vpop.trf.xlu1 }
 0x125   :  { %v151_v3 = vadd.f32 %v150_v1, %v133_v2 }
 0x127   :  { %v189_v4 = vmul.f32 -1.442695, %v151_v3 }
 0x129   :  { %195 = vpow2.f32 %v189_v4 }
 0x12f   :  { %v196_v5 = vpop.eup %195 }
 0x130   :  { %v155_v6 = vadd.f32 1.0, %v196_v5 }
 0x132   :  { %197 = vrcp.f32 %v155_v6  ;;  %v167_v10 = vand.u32 2147483648, %v155_v6  ;;  %v165_v12 = vand.u32 2147483647, %v155_v6  ;;  %vm161_vm2 = vweird.f32 %v155_v6 }
 0x134   :  { %v168_v14 = vor.u32 1.1754944e-38, %v167_v10  ;;  %vm166_vm4 = vcmp.eq.f32.partialorder %v165_v12, 8.507059e+37 }
 0x138   :  { %v198_v7 = vpop.eup %197 }
 0x139   :  { %v157_v8 = vmul.f32 %v198_v7, %v155_v6  ;;  %vm162_vm1 = vweird.f32 %v198_v7 }
 0x13a   :  { %vm163_vm3 = vmor %vm161_vm2, %vm162_vm1 }
 0x13b   :  { %v158_v9 = vsub.f32 1.0, %v157_v8 }
 0x13d   :  { %v159_v11 = vmul.f32 %v198_v7, %v158_v9 }
 0x13f   :  { %v160_v13 = vadd.f32 %v198_v7, %v159_v11 }
 0x141   :  { %v164_v15 = vsel %vm163_vm3, %v198_v7, %v160_v13 }
 0x142   :  { %v169_v16 = vsel %vm166_vm4, %v168_v14, %v164_v15 }
 0x143   :  { %171 = vst [vmem:[#allocation6] sm:$0x1] %v169_v16 }
 0x144   :  { %182 = dma.vmem_to_hbm [thread:$0]  %s178_s22, 16, %s180_s2, [#allocation5]  }
 0x145   :  { %249 = dma.done.wait [#allocation5], 16  }
 0x146   :  { %250 = vsyncadd [#allocation5], 4294967280 }
 0x147   :  { %187 = vsyncpa [#allocation4], 1 }
 0x148   :  { %188 = vsyncpa [#allocation5], 1 }

</bundles_post_ra>
